<compile_context>
chip_gen: v7x
topology: tpu7x:2x2x1
jax: 0.10.0
libtpu: 0.0.40
codegen_flags: <defaults>
</compile_context>

<pallas_src>
import functools

import jax
import jax.numpy as jnp
from jax.experimental import pallas as pl
from jax.experimental.pallas import tpu as pltpu


def _round_up(a, b):
    return ((a + b - 1) // b) * b


def mlp_kernel(x_ref, wgu_ref, bgu_ref, wd_ref, bd_ref, o_ref, acc_ref):
    # x_ref:   (tm, n_embd)
    # wgu_ref: (n_embd, 2*th)   -> [gate_tile | up_tile] for this hidden tile
    # bgu_ref: (1, 2*th)
    # wd_ref:  (th, n_embd)
    # bd_ref:  (1, n_embd)
    # o_ref:   (tm, n_embd)     acc_ref: (tm, n_embd) f32 scratch
    h_idx = pl.program_id(1)
    n_h = pl.num_programs(1)
    th = wd_ref.shape[0]

    @pl.when(h_idx == 0)
    def _init():
        acc_ref[...] = jnp.zeros_like(acc_ref)

    x = x_ref[...]
    # Fused gate+up projection for this hidden tile (single MXU matmul).
    gu = jnp.dot(x, wgu_ref[...], preferred_element_type=jnp.float32) + bgu_ref[...]
    g = gu[:, :th]
    u = gu[:, th:]
    # SwiGLU: SiLU(g) * u  (exp goes to the EUP slot; f32 math on the VPU).
    h = (g * jax.nn.sigmoid(g)) * u
    # Partial down-projection, accumulated in f32.
    acc_ref[...] += jnp.dot(h.astype(x.dtype), wd_ref[...],
                            preferred_element_type=jnp.float32)

    @pl.when(h_idx == n_h - 1)
    def _finalize():
        o_ref[...] = (acc_ref[...] + bd_ref[...]).astype(o_ref.dtype)


@functools.partial(jax.jit, static_argnames=("tile_m", "tile_h"))
def mlp_pallas(x, wg, bg, wu, bu, wd, bd, *, tile_m=128, tile_h=None):
    """x: (T, n_embd). Weights in [in, out] layout, biases as (1, out)."""
    T, n_embd = x.shape
    hidden = wg.shape[1]

    # ---- tile selection -----------------------------------------------------
    if tile_h is None:
        tile_h = 256 if hidden % 256 == 0 else 128
    th = min(tile_h, hidden)
    assert hidden % th == 0, "hidden must be a multiple of tile_h"
    n_h = hidden // th

    tm = min(tile_m, _round_up(T, 8))
    T_pad = _round_up(T, tm)
    x_p = jnp.pad(x, ((0, T_pad - T), (0, 0))) if T_pad != T else x

    # ---- fuse gate+up weights, interleaved per hidden tile --------------------
    # Column block h of wgu (width 2*th) == [gate cols h*th:(h+1)*th | up cols ...]
    wgu = jnp.concatenate(
        [wg.reshape(n_embd, n_h, 1, th), wu.reshape(n_embd, n_h, 1, th)], axis=2
    ).reshape(n_embd, 2 * hidden)
    bgu = jnp.concatenate(
        [bg.reshape(1, n_h, 1, th), bu.reshape(1, n_h, 1, th)], axis=2
    ).reshape(1, 2 * hidden)

    # ---- cost / VMEM budgeting ------------------------------------------------
    itm = jnp.dtype(x.dtype).itemsize
    flops = 2 * T_pad * n_embd * 2 * hidden + 2 * T_pad * hidden * n_embd + 4 * T_pad * hidden
    bytes_accessed = (x_p.size + wgu.size + wd.size + 2 * T_pad * n_embd) * itm + (bgu.size + bd.size) * 4
    cost = pl.CostEstimate(flops=int(flops),
                           transcendentals=int(T_pad * hidden),
                           bytes_accessed=int(bytes_accessed))
    per_step = (tm * n_embd + n_embd * 2 * th + 2 * th + th * n_embd + n_embd
                + tm * n_embd) * itm
    vmem_limit = int(min(max(2 * per_step + tm * n_embd * 4 + (8 << 20), 32 << 20),
                         64 << 20))  # stay inside v7x's 64 MiB VMEM

    grid = (T_pad // tm, n_h)
    out = pl.pallas_call(
        mlp_kernel,
        out_shape=jax.ShapeDtypeStruct((T_pad, n_embd), x.dtype),
        grid_spec=pltpu.PrefetchScalarGridSpec(
            num_scalar_prefetch=0,
            grid=grid,
            in_specs=[
                pl.BlockSpec((tm, n_embd), lambda i, h: (i, 0)),      # x tile
                pl.BlockSpec((n_embd, 2 * th), lambda i, h: (0, h)),  # fused gate|up W
                pl.BlockSpec((1, 2 * th), lambda i, h: (0, h)),       # fused gate|up b
                pl.BlockSpec((th, n_embd), lambda i, h: (h, 0)),      # down W tile
                pl.BlockSpec((1, n_embd), lambda i, h: (0, 0)),       # down b
            ],
            out_specs=pl.BlockSpec((tm, n_embd), lambda i, h: (i, 0)),
            scratch_shapes=[pltpu.VMEM((tm, n_embd), jnp.float32)],
        ),
        compiler_params=pltpu.CompilerParams(
            dimension_semantics=("parallel", "arbitrary"),
            vmem_limit_bytes=vmem_limit),
        cost_estimate=cost,
    )(x_p, wgu, bgu, wd, bd)
    return out[:T] if T_pad != T else out


def init_linear(key, in_features, out_features, use_bias, dtype=jnp.float32):
    """Deterministic init mimicking nn.Linear (uniform +/- 1/sqrt(in))."""
    kw, kb = jax.random.split(key)
    bound = 1.0 / jnp.sqrt(in_features)
    # Stored as [in, out] (transpose of PyTorch's [out, in]) for x @ W.
    w = jax.random.uniform(kw, (in_features, out_features), dtype,
                           minval=-bound, maxval=bound)
    if use_bias:
        b = jax.random.uniform(kb, (1, out_features), dtype,
                               minval=-bound, maxval=bound)
    else:
        b = jnp.zeros((1, out_features), dtype)
    return w, b


def mlp_reference(x, wg, bg, wu, bu, wd, bd):
    g = x @ wg + bg
    u = x @ wu + bu
    h = (g * jax.nn.sigmoid(g)) * u
    return h @ wd + bd


def _make_params(key, n_embd, use_bias=True):
    kg, ku, kd = jax.random.split(key, 3)
    hidden = 4 * n_embd
    wg, bg = init_linear(kg, n_embd, hidden, use_bias)
    wu, bu = init_linear(ku, n_embd, hidden, use_bias)
    wd, bd = init_linear(kd, hidden, n_embd, use_bias)
    return wg, bg, wu, bu, wd, bd


if __name__ == "__main__":
    key = jax.random.PRNGKey(0)
    k1, k2, k3, kp1, kp2 = jax.random.split(key, 5)

    # --- Test 1: module-implied toy shapes (batch=2, seq=8, n_embd=32), f32 ---
    batch, seq, n_embd = 2, 8, 32
    x = jax.random.normal(k1, (batch, seq, n_embd), jnp.float32)
    wg, bg, wu, bu, wd, bd = _make_params(kp1, n_embd)
    x2d = x.reshape(batch * seq, n_embd)
    out = mlp_pallas(x2d, wg, bg, wu, bu, wd, bd).reshape(batch, seq, n_embd)
    jax.block_until_ready(out)
    ref = mlp_reference(x2d, wg, bg, wu, bu, wd, bd).reshape(batch, seq, n_embd)
    assert jnp.allclose(out, ref, atol=1e-5, rtol=1e-5), "mismatch (toy f32)"

    # --- Test 2: multi-tile grid + ragged T (padding path), f32 ---------------
    n_embd2 = 128
    T2 = 200                        # not a multiple of tile_m -> exercises padding
    x2 = jax.random.normal(k2, (T2, n_embd2), jnp.float32)
    p2 = _make_params(kp2, n_embd2)
    out2 = mlp_pallas(x2, *p2, tile_m=128, tile_h=128)   # grid = (2, 4)
    jax.block_until_ready(out2)
    ref2 = mlp_reference(x2, *p2)
    assert jnp.allclose(out2, ref2, atol=1e-3, rtol=1e-3), "mismatch (tiled f32)"

    # --- Test 3: bf16 activations/weights, f32 accumulation -------------------
    T3 = 256
    x3 = jax.random.normal(k3, (T3, n_embd2), jnp.float32)
    wg3, bg3, wu3, bu3, wd3, bd3 = p2
    x3b = x3.astype(jnp.bfloat16)
    out3 = mlp_pallas(x3b, wg3.astype(jnp.bfloat16), bg3,
                      wu3.astype(jnp.bfloat16), bu3,
                      wd3.astype(jnp.bfloat16), bd3,
                      tile_m=128, tile_h=256)            # grid = (2, 2)
    jax.block_until_ready(out3)
    ref3 = mlp_reference(x3b.astype(jnp.float32),
                         wg3.astype(jnp.bfloat16).astype(jnp.float32), bg3,
                         wu3.astype(jnp.bfloat16).astype(jnp.float32), bu3,
                         wd3.astype(jnp.bfloat16).astype(jnp.float32), bd3)
    assert jnp.allclose(out3.astype(jnp.float32), ref3, atol=3e-2, rtol=3e-2), \
        "mismatch (bf16)"

    print("KERNEL_OK")
</pallas_src>

<mosaic_0001>
module attributes {stable_mosaic.version = 11 : i64} {
  func.func @mlp_kernel(%arg0: i32, %arg1: i32, %arg2: memref<16x32xf32, #tpu.memory_space<vmem>>, %arg3: memref<32x256xf32, #tpu.memory_space<vmem>>, %arg4: memref<1x256xf32, #tpu.memory_space<vmem>>, %arg5: memref<128x32xf32, #tpu.memory_space<vmem>>, %arg6: memref<1x32xf32, #tpu.memory_space<vmem>>, %arg7: memref<16x32xf32, #tpu.memory_space<vmem>>, %arg8: memref<16x32xf32, #tpu.memory_space<vmem>>) attributes {dimension_semantics = [#tpu.dimension_semantics<parallel>, #tpu.dimension_semantics<arbitrary>], iteration_bounds = array<i64: 1, 1>, scalar_prefetch = 0 : i64, scratch_operands = 1 : i64, tpu.core_type = #tpu.core_type<tc>, window_params = [{transform_indices = @transform_0, window_bounds = array<i64: 16, 32>}, {transform_indices = @transform_1, window_bounds = array<i64: 32, 256>}, {transform_indices = @transform_2, window_bounds = array<i64: 1, 256>}, {transform_indices = @transform_3, window_bounds = array<i64: 128, 32>}, {pipeline_mode = #tpu.pipeline_mode<synchronous>, transform_indices = @transform_4, window_bounds = array<i64: 1, 32>}, {transform_indices = @transform_5, window_bounds = array<i64: 16, 32>}]} {
    %c0_i32 = arith.constant 0 : i32
    %0 = arith.cmpi eq, %arg1, %c0_i32 : i32
    %1 = arith.extui %0 : i1 to i32
    %c0_i32_0 = arith.constant 0 : i32
    %2 = arith.cmpi ne, %1, %c0_i32_0 : i32
    scf.if %2 {
      %cst_16 = arith.constant 0.000000e+00 : f32
      %26 = vector.broadcast %cst_16 : f32 to vector<16x32xf32>
      %c0_17 = arith.constant 0 : index
      %c0_18 = arith.constant 0 : index
      %27 = vector.load %arg8[%c0_17, %c0_18] : memref<16x32xf32, #tpu.memory_space<vmem>>, vector<16x32xf32>
      tpu.vector_store %arg8[%c0_17, %c0_18], %26 {strides = array<i32>} : memref<16x32xf32, #tpu.memory_space<vmem>>, vector<16x32xf32>,
    } else {
    }
    %c0 = arith.constant 0 : index
    %c0_1 = arith.constant 0 : index
    %3 = vector.load %arg2[%c0, %c0_1] : memref<16x32xf32, #tpu.memory_space<vmem>>, vector<16x32xf32>
    %c0_2 = arith.constant 0 : index
    %c0_3 = arith.constant 0 : index
    %4 = vector.load %arg3[%c0_2, %c0_3] : memref<32x256xf32, #tpu.memory_space<vmem>>, vector<32x256xf32>
    %cst = arith.constant dense<0.000000e+00> : vector<16x256xf32>
    %5 = tpu.matmul %3, %4, %cst {dimension_numbers = #tpu.dot_dimension_numbers<[1], [0], [0], [1], [0, 0, 1, 1], [], []>} : vector<16x32xf32>, vector<32x256xf32>, vector<16x256xf32> -> vector<16x256xf32>
    %c0_4 = arith.constant 0 : index
    %c0_5 = arith.constant 0 : index
    %6 = vector.load %arg4[%c0_4, %c0_5] : memref<1x256xf32, #tpu.memory_space<vmem>>, vector<1x256xf32>
    %7 = vector.broadcast %6 : vector<1x256xf32> to vector<16x256xf32>
    %8 = arith.addf %5, %7 : vector<16x256xf32>
    %9 = vector.extract_strided_slice %8 {offsets = [0, 0], sizes = [16, 128], strides = [1, 1]} : vector<16x256xf32> to vector<16x128xf32>
    %10 = vector.extract_strided_slice %8 {offsets = [0, 128], sizes = [16, 128], strides = [1, 1]} : vector<16x256xf32> to vector<16x128xf32>
    %11 = arith.negf %9 : vector<16x128xf32>
    %12 = math.exp %11 : vector<16x128xf32>
    %cst_6 = arith.constant 1.000000e+00 : f32
    %13 = vector.broadcast %cst_6 : f32 to vector<16x128xf32>
    %14 = arith.addf %13, %12 : vector<16x128xf32>
    %15 = arith.divf %13, %14 : vector<16x128xf32>
    %16 = arith.mulf %9, %15 : vector<16x128xf32>
    %17 = arith.mulf %16, %10 : vector<16x128xf32>
    %c0_7 = arith.constant 0 : index
    %c0_8 = arith.constant 0 : index
    %18 = vector.load %arg8[%c0_7, %c0_8] : memref<16x32xf32, #tpu.memory_space<vmem>>, vector<16x32xf32>
    %c0_9 = arith.constant 0 : index
    %c0_10 = arith.constant 0 : index
    %19 = vector.load %arg5[%c0_9, %c0_10] : memref<128x32xf32, #tpu.memory_space<vmem>>, vector<128x32xf32>
    %cst_11 = arith.constant dense<0.000000e+00> : vector<16x32xf32>
    %20 = tpu.matmul %17, %19, %cst_11 {dimension_numbers = #tpu.dot_dimension_numbers<[1], [0], [0], [1], [0, 0, 1, 1], [], []>} : vector<16x128xf32>, vector<128x32xf32>, vector<16x32xf32> -> vector<16x32xf32>
    %21 = arith.addf %18, %20 : vector<16x32xf32>
    %c0_12 = arith.constant 0 : index
    %c0_13 = arith.constant 0 : index
    %22 = vector.load %arg8[%c0_12, %c0_13] : memref<16x32xf32, #tpu.memory_space<vmem>>, vector<16x32xf32>
    tpu.vector_store %arg8[%c0_12, %c0_13], %21 {strides = array<i32>} : memref<16x32xf32, #tpu.memory_space<vmem>>, vector<16x32xf32>,
    %c0_i32_14 = arith.constant 0 : i32
    %23 = arith.cmpi eq, %arg1, %c0_i32_14 : i32
    %24 = arith.extui %23 : i1 to i32
    %c0_i32_15 = arith.constant 0 : i32
    %25 = arith.cmpi ne, %24, %c0_i32_15 : i32
    scf.if %25 {
      %c0_16 = arith.constant 0 : index
      %c0_17 = arith.constant 0 : index
      %26 = vector.load %arg8[%c0_16, %c0_17] : memref<16x32xf32, #tpu.memory_space<vmem>>, vector<16x32xf32>
      %c0_18 = arith.constant 0 : index
      %c0_19 = arith.constant 0 : index
      %27 = vector.load %arg6[%c0_18, %c0_19] : memref<1x32xf32, #tpu.memory_space<vmem>>, vector<1x32xf32>
      %28 = vector.broadcast %27 : vector<1x32xf32> to vector<16x32xf32>
      %29 = arith.addf %26, %28 : vector<16x32xf32>
      %c0_20 = arith.constant 0 : index
      %c0_21 = arith.constant 0 : index
      %30 = vector.load %arg7[%c0_20, %c0_21] : memref<16x32xf32, #tpu.memory_space<vmem>>, vector<16x32xf32>
      tpu.vector_store %arg7[%c0_20, %c0_21], %29 {strides = array<i32>} : memref<16x32xf32, #tpu.memory_space<vmem>>, vector<16x32xf32>,
    } else {
    }
    return
  }
  func.func @transform_0(%arg0: i32, %arg1: i32) -> (i32, i32) {
    %c0_i32 = arith.constant 0 : i32
    %c0_i32_0 = arith.constant 0 : i32
    return %arg0, %c0_i32 : i32, i32
  }
  func.func @transform_1(%arg0: i32, %arg1: i32) -> (i32, i32) {
    %c0_i32 = arith.constant 0 : i32
    %c0_i32_0 = arith.constant 0 : i32
    return %c0_i32, %arg1 : i32, i32
  }
  func.func @transform_2(%arg0: i32, %arg1: i32) -> (i32, i32) {
    %c0_i32 = arith.constant 0 : i32
    %c0_i32_0 = arith.constant 0 : i32
    return %c0_i32, %arg1 : i32, i32
  }
  func.func @transform_3(%arg0: i32, %arg1: i32) -> (i32, i32) {
    %c0_i32 = arith.constant 0 : i32
    %c0_i32_0 = arith.constant 0 : i32
    return %arg1, %c0_i32 : i32, i32
  }
  func.func @transform_4(%arg0: i32, %arg1: i32) -> (i32, i32) {
    %c0_i32 = arith.constant 0 : i32
    %c0_i32_0 = arith.constant 0 : i32
    %c0_i32_1 = arith.constant 0 : i32
    return %c0_i32, %c0_i32_0 : i32, i32
  }
  func.func @transform_5(%arg0: i32, %arg1: i32) -> (i32, i32) {
    %c0_i32 = arith.constant 0 : i32
    %c0_i32_0 = arith.constant 0 : i32
    return %arg0, %c0_i32 : i32, i32
  }
}

</mosaic_0001>

<bundles_post_ra>
// kernel: mlp_pallas.1
= control target key start
LH: loop header
LB: loop body
LE: loop exit
PB: predicated region body
PF: predicated region fallthrough
CT: control target
= control target key end

     0   :  { %vm25_vm0 = vcmask 261120   ;;  %v413_v7 = vmov 0.0   ;;  %s551_s0 = inlined_call_operand.vmem [shape: f32[16,32], index: 0, kind: input, shape index: {}]   ;;  %s552_s1 = inlined_call_operand.vmem [shape: f32[32,256], index: 1, kind: input, shape index: {}]   ;;  %s553_s2 = inlined_call_operand.vmem [shape: f32[1,256], index: 2, kind: input, shape index: {}]   ;;  %s554_s3 = inlined_call_operand.vmem [shape: f32[128,32], index: 3, kind: input, shape index: {}]   ;;  %s555_s4 = inlined_call_operand.vmem [shape: f32[1,32], index: 4, kind: input, shape index: {}]   ;;  %s556_s5 = inlined_call_operand.hbm [shape: f32[16,32], index: 5, kind: output, shape index: {}]  }
   0x1   :  { %v31_v0 = vld [vmem:[%s552_s1 + $0x8] sm:$0xff]  ;;  %v33_v1 = vld [vmem:[%s552_s1 + $0x18] sm:$0xff]  ;;  %v30_v2 = vld [vmem:[%s552_s1] sm:$0xff]  ;;  %26 = vst.msk [vmem:[#allocation2] sm:$0xff] %vm25_vm0, %v413_v7  ;;  %121 = vmatprep.mubr.f32.mxu0 %v413_v7 }
   0x2   :  { %v337_v3 = vpack.c.bf16 %v33_v1, %v31_v0  ;;  %v32_v4 = vld [vmem:[%s552_s1 + $0x10] sm:$0xff]  ;;  %v35_v5 = vld [vmem:[%s552_s1 + $0x28] sm:$0xff]  ;;  %v37_v6 = vld [vmem:[%s552_s1 + $0x38] sm:$0xff]  ;;  %27 = vst.msk [vmem:[#allocation2 + $0x8] sm:$0xff] %vm25_vm0, %v413_v7 }
   0x3   :  { %v339_v8 = vpack.c.bf16 %v32_v4, %v30_v2  ;;  %v341_v9 = vpack.c.bf16 %v37_v6, %v35_v5  ;;  %v34_v10 = vld [vmem:[%s552_s1 + $0x20] sm:$0xff]  ;;  %v36_v11 = vld [vmem:[%s552_s1 + $0x30] sm:$0xff] }
   0x4   :  { %338 = vmatprep.subr.bf16.mxu0 %v337_v3 }
   0x5   :  { %10 = vsyncpa [#allocation4], 0  ;;  %340 = vmatpush1.bf16.msra.mxu0 %v339_v8  ;;  %v343_v12 = vpack.c.bf16 %v36_v11, %v34_v10  ;;  %v28_v13 = vld [vmem:[%s551_s0] sm:$0xff]  ;;  %v29_v14 = vld [vmem:[%s551_s0 + $0x8] sm:$0xff]  ;;  %v40_v39 = vlaneseq  ;;  %s414_s19 = smov [#allocation3]  }
   0x6   :  { %342 = vmatprep.subr.bf16.mxu0 %v341_v9  ;;  %v152_v15 = vld [vmem:[%s554_s3] sm:$0xff]  ;;  %v153_v16 = vld [vmem:[%s554_s3 + $0x8] sm:$0xff]  ;;  %v154_v18 = vld [vmem:[%s554_s3 + $0x10] sm:$0xff]  ;;  %s268_s0 = sshll.u32 %s414_s19, 4  ;;  %s269_s0 = int_to_ptr.vmem [resolvable:$true] %s268_s0 }
   0x7   :  { %v345_v17 = vpack.c.bf16 %v153_v16, %v152_v15  ;;  %v155_v19 = vld [vmem:[%s554_s3 + $0x18] sm:$0xff]  ;;  %v156_v21 = vld [vmem:[%s554_s3 + $0x20] sm:$0xff]  ;;  %v157_v22 = vld [vmem:[%s554_s3 + $0x28] sm:$0xff]  ;;  %v41_v40 = vshrl.u32 %v40_v39, 7  ;;  %s389_s20 = scalar_lea.vmem %s269_s0, 256  ;;  %p394_p1 = scmp.lt.s32.totalorder %s269_s0, %s269_s0 }
   0x8   :  { %v349_v20 = vpack.c.bf16 %v155_v19, %v154_v18  ;;  %v353_v23 = vpack.c.bf16 %v157_v22, %v156_v21  ;;  %v158_v24 = vld [vmem:[%s554_s3 + $0x30] sm:$0xff]  ;;  %v159_v25 = vld [vmem:[%s554_s3 + $0x38] sm:$0xff]  ;;  %v160_v27 = vld [vmem:[%s554_s3 + $0x40] sm:$0xff]  ;;  %p390_p0 = scmp.ne.s32.totalorder %s269_s0, %s389_s20  ;;  %p395_p2 = scmp.lt.s32.totalorder %s389_s20, %s389_s20 }
   0x9   :  { %344 = vmatpush1.bf16.msra.mxu0 %v343_v12  ;;  %346 = vmatprep.subr.bf16.mxu1 %v345_v17  ;;  %v357_v26 = vpack.c.bf16 %v159_v25, %v158_v24  ;;  %v161_v28 = vld [vmem:[%s554_s3 + $0x48] sm:$0xff]  ;;  %v162_v30 = vld [vmem:[%s554_s3 + $0x50] sm:$0xff]  ;;  %v163_v31 = vld [vmem:[%s554_s3 + $0x58] sm:$0xff]  ;;  %v42_v41 = vsub.s32 0, %v41_v40  ;;  %v46_v56 = vsub.s32 1, %v41_v40 }
   0xa   :  { %348 = vmatpush3.bf16.msra.mxu1 %v345_v17  ;;  %v361_v29 = vpack.c.bf16 %v161_v28, %v160_v27  ;;  %v365_v32 = vpack.c.bf16 %v163_v31, %v162_v30  ;;  %v164_v33 = vld [vmem:[%s554_s3 + $0x60] sm:$0xff]  ;;  %v165_v34 = vld [vmem:[%s554_s3 + $0x68] sm:$0xff]  ;;  %v166_v36 = vld [vmem:[%s554_s3 + $0x70] sm:$0xff]  ;;  %p396_p3 = por %p395_p2, %p394_p1 }
   0xb   :  { %350 = vmatprep.subr.bf16.mxu1 %v349_v20  ;;  %v369_v35 = vpack.c.bf16 %v165_v34, %v164_v33  ;;  %v167_v37 = vld [vmem:[%s554_s3 + $0x78] sm:$0xff]  ;;  %v38_v42 = vld [vmem:[%s553_s2] sm:$0x3]  ;;  %v151_v2 = vld [vmem:[#allocation2 + $0x8] sm:$0xff] }
   0xc   :  { %279 = vmatmul.mubr.msk.f32.vlgmr.msra.gmra.mrb[0].mxu0 %vm25_vm0, %v28_v13  ;;  %v373_v38 = vpack.c.bf16 %v167_v37, %v166_v36  ;;  %v43_v43 = vrot.slane %v38_v42, %v42_v41  ;;  %v47_v57 = vrot.slane %v38_v42, %v46_v56  ;;  %v150_v3 = vld [vmem:[#allocation2] sm:$0xff]  ;;  %p397_p4 = pnand %p396_p3, %p390_p0 }
   0xd   :  { %127 = vmatprep.mubr.f32.mxu0 %v413_v7  ;;  %v283_v8 = vld [vmem:[%s555_s4] ss:$0 sm:$0xff] }
   0xe   :  { %352 = vmatpush3.bf16.msra.mxu1 %v349_v20 }
   0xf   :  { %354 = vmatprep.subr.bf16.mxu1 %v353_v23 }
  0x10   :  { %280 = vmatmul.mubr.msk.f32.gmra.mrb[2].mxu0 %vm25_vm0, %v29_v14 }
  0x12   :  { %356 = vmatpush3.bf16.msra.mxu1 %v353_v23 }
  0x13   :  { %358 = vmatprep.subr.bf16.mxu1 %v357_v26 }
  0x16   :  { %360 = vmatpush3.bf16.msra.mxu1 %v357_v26 }
  0x17   :  { %362 = vmatprep.subr.bf16.mxu1 %v361_v29 }
  0x1a   :  { %364 = vmatpush3.bf16.msra.mxu1 %v361_v29 }
  0x1b   :  { %366 = vmatprep.subr.bf16.mxu1 %v365_v32 }
  0x1e   :  { %368 = vmatpush3.bf16.msra.mxu1 %v365_v32 }
  0x1f   :  { %370 = vmatprep.subr.bf16.mxu1 %v369_v35 }
  0x22   :  { %372 = vmatpush3.bf16.msra.mxu1 %v369_v35 }
  0x23   :  { %374 = vmatprep.subr.bf16.mxu1 %v373_v38 }
  0x26   :  { %376 = vmatpush3.bf16.msra.mxu1 %v373_v38 }
  0xdf   :  { %v123_v44 = vpop.f32.mrb[0].mxu0 }
  0xe0   :  { %v124_v45 = vadd.f32 %v123_v44, %v43_v43  ;;  %v125_v46 = vpop.f32.mrb[1].mxu0 }
  0xe1   :  { %v126_v59 = vadd.f32 %v125_v46, %v47_v57 }
  0xe2   :  { %v281_v47 = vmul.f32 -1.442695, %v124_v45 }
  0xe3   :  { %v129_v48 = vpop.f32.mrb[2].mxu0 }
  0xe4   :  { %381 = vpow2.f32 %v281_v47  ;;  %v130_v49 = vadd.f32 %v129_v48, %v43_v43  ;;  %v131_v50 = vpop.f32.mrb[3].mxu0 }
  0xe5   :  { %v132_v0 = vadd.f32 %v131_v50, %v47_v57 }
  0xe6   :  { %v282_v51 = vmul.f32 -1.442695, %v130_v49 }
  0xe8   :  { %383 = vpow2.f32 %v282_v51 }
  0xee   :  { %v382_v52 = vpop.eup %381 }
  0xef   :  { %v140_v53 = vadd.f32 1.0, %v382_v52 }
  0xf1   :  { %385 = vrcp.f32 %v140_v53 }
  0xf2   :  { %v384_v54 = vpop.eup %383 }
  0xf3   :  { %v141_v55 = vadd.f32 1.0, %v384_v54 }
  0xf5   :  { %387 = vrcp.f32 %v141_v55 }
  0xfb   :  { %v386_v58 = vpop.eup %385 }
  0xfc   :  { %v146_v60 = vmul.f32 %v386_v58, %v124_v45 }
  0xfe   :  { %v148_v61 = vmul.f32 %v146_v60, %v126_v59 }
  0xff   :  { %v388_v62 = vpop.eup %387 }
 0x100   :  { %v147_v63 = vmul.f32 %v388_v62, %v130_v49  ;;  %334 = vmatprep.mubr.f32.mxu1 %v148_v61 }
 0x102   :  { %v149_v1 = vmul.f32 %v147_v63, %v132_v0 }
 0x104   :  { %335 = vmatmul.mubr.f32.vlgmr.msra.gmra.mrb[0].mxu1 %v149_v1 }
 0x1d7   :  { %v336_v4 = vpop.f32.mrb[0].mxu1 }
 0x1d8   :  { %v244_v5 = vadd.f32 %v336_v4, %v151_v2  ;;  %v234_v6 = vpop.f32.mrb[1].mxu1 }
 0x1d9   :  { %v243_v7 = vadd.f32 %v234_v6, %v150_v3 }
 0x1da   :  { %246 = vst.msk [vmem:[#allocation2 + $0x8] sm:$0xff] %vm25_vm0, %v244_v5 }
 0x1db   :  { %245 = vst.msk [vmem:[#allocation2] sm:$0xff] %vm25_vm0, %v243_v7 }
 0x1e1   :  { %v251_v9 = vld [vmem:[#allocation2 + $0x8] sm:$0xff] }
 0x1e2   :  { %v250_v10 = vld [vmem:[#allocation2] sm:$0xff]  ;;  %v260_v11 = vadd.f32 %v283_v8, %v251_v9 }
 0x1e3   :  { %v259_v12 = vadd.f32 %v283_v8, %v250_v10 }
 0x1e4   :  { %262 = vst.msk [vmem:[#allocation3 + $0x8] sm:$0xff] %vm25_vm0, %v260_v11 }
 0x1e5   :  { %261 = vst.msk [vmem:[#allocation3] sm:$0xff] %vm25_vm0, %v259_v12 }
 0x1e6   :  { %400 = shalt.err (!%p397_p4)
}
 0x1e7   :  { %s401_s22 = scalar_lea.hbm %s556_s5, 256 }
 0x1e8   :  { %p402_p5 = scmp.ne.s32.totalorder %s556_s5, %s401_s22  ;;  %p405_p6 = scmp.lt.u32.totalorder %s401_s22, %s556_s5 }
 0x1ea   :  { %p407_p7 = pnand %p405_p6, %p402_p5 }
 0x1ec   :  { %410 = shalt.err (!%p407_p7)
}
 0x1ed   :  { %s415_s27 = smov 128   ;;  %s416_s28 = smov 8  }
 0x1ee   :  { %274 = dma.vmem_to_hbm [thread:$0]  %s269_s0, 256, %s556_s5, [#allocation4], %s415_s27, %s415_s27, %s416_s28  }
 0x1ef   :  { %411 = dma.done.wait [#allocation4], 256  }
 0x1f0   :  { %412 = vsyncadd [#allocation4], 4294967040 }
 0x1f1   :  { %278 = vsyncpa [#allocation4], 1 }

</bundles_post_ra>
